<compile_context>
chip_gen: v7x
topology: tpu7x:2x2x1
jax: 0.10.0
libtpu: 0.0.40
codegen_flags: <defaults>
</compile_context>

<pallas_src>
import functools

import jax
import jax.numpy as jnp
from jax.experimental import pallas as pl
from jax.experimental.pallas import tpu as pltpu


def _ccel_kernel(tgt_ref, logits_ref, loss_ref, *, k, keep_bf16):
    """Processes one (TILE_N, C) row tile; accumulates into loss_ref (1,1)."""
    step = pl.program_id(1)

    @pl.when(step == 0)
    def _():
        loss_ref[...] = jnp.zeros_like(loss_ref)

    x = logits_ref[...]                                      # (TILE_N, C)
    if not (keep_bf16 and x.dtype == jnp.bfloat16):
        x = x.astype(jnp.float32)
    n, c = x.shape

    col = jax.lax.broadcasted_iota(jnp.int32, (n, c), 1)     # column ids
    tgt = tgt_ref[...]                                       # (TILE_N, 1) int32

    # gather(1, target): raw logit at the target class per row.
    # Exactly one nonzero element per row -> the sum is exact in any dtype.
    x_tgt = jnp.sum(
        jnp.where(col == tgt, x, jnp.zeros((), x.dtype)), axis=1, keepdims=True
    ).astype(jnp.float32)

    # top-k (descending) raw-logit values; ties resolved to the first
    # occurrence (matches torch.argsort order; tie order cannot change the
    # top-k SUM anyway).  k is tiny -> statically unrolled.  The last
    # iteration only needs the max, so the masking passes are skipped there.
    work = x
    topk_sum = jnp.zeros((n, 1), jnp.float32)
    for kk in range(k):
        cur_max = jnp.max(work, axis=1, keepdims=True)               # (N,1)
        topk_sum = topk_sum + cur_max.astype(jnp.float32)
        if kk + 1 < k:
            is_max = work == cur_max
            first_idx = jnp.min(jnp.where(is_max, col, c), axis=1, keepdims=True)
            work = jnp.where(col == first_idx,
                             jnp.array(-jnp.inf, dtype=work.dtype), work)

    # log_softmax shift cancels exactly: per_row = topk_sum(x) - k * x_target
    tile_sum = jnp.sum(topk_sum - jnp.float32(k) * x_tgt)
    loss_ref[...] += tile_sum


def _tpu_params():
    """Generation-aware tiling / VMEM budgets + bf16-VPU availability."""
    kind = ""
    try:
        kind = jax.devices()[0].device_kind.lower()
    except Exception:
        pass
    is_v7 = ("v7" in kind) or ("7x" in kind)
    is_v6 = "v6" in kind
    if is_v7:
        # 64 MiB physical VMEM per TC: keep tiles <= 8 MiB, scoped limit <= 48 MiB.
        return dict(max_tile_bytes=8 << 20, vmem_limit=48 << 20,
                    new_vpu=True, vmem_cap=56 << 20)
    # v5e / v6e: 128 MiB physical VMEM -> 16 MiB tiles, 64 MiB scoped limit.
    return dict(max_tile_bytes=16 << 20, vmem_limit=64 << 20,
                new_vpu=is_v6, vmem_cap=112 << 20)


def _pick_tile_n(n, c, itemsize, max_tile_bytes, max_rows=8192):
    """Row-tile size: sublane-aligned, governed by the per-buffer byte budget."""
    rows_by_vmem = max(8, max_tile_bytes // max(1, c * itemsize))
    n_rounded = max(8, ((n + 7) // 8) * 8)
    rows = min(max_rows, rows_by_vmem, n_rounded)
    rows = max(8, (rows // 8) * 8)
    return rows


def contrastive_cross_entropy_loss(logits, target, contrastive_num=2, tile_n=None):
    """logits: (N, C) float (f32 or bf16); target: (N,) int.  Scalar f32 loss."""
    n, c = logits.shape
    itemsize = jnp.dtype(logits.dtype).itemsize
    params = _tpu_params()
    if tile_n is None:
        tile_n = _pick_tile_n(n, c, itemsize, params["max_tile_bytes"])

    # Split the row-tile range 2 ways along a leading "parallel" grid axis:
    # each split owns its own resident (1,1) accumulator row, partials are
    # summed in the wrapper.  Uses both cores on megacore / dual-TC chips.
    n_tiles = pl.cdiv(n, tile_n)
    n_splits = 2 if n_tiles >= 2 else 1
    n_tiles_padded = ((n_tiles + n_splits - 1) // n_splits) * n_splits
    steps = n_tiles_padded // n_splits
    n_pad = n_tiles_padded * tile_n

    tgt2d = target.astype(jnp.int32).reshape(n, 1)
    if n_pad != n:
        # Padded rows: zero logits + target 0 -> contribute exactly 0.
        logits = jnp.pad(logits, ((0, n_pad - n), (0, 0)))
        tgt2d = jnp.pad(tgt2d, ((0, n_pad - n), (0, 0)))

    # bf16 compare/select path only where the VPU has native bf16 ALUs.
    keep_bf16 = bool(params["new_vpu"]) and logits.dtype == jnp.bfloat16

    # Guard the scoped-VMEM limit against huge-C tiles (double-buffered logits).
    tile_bytes = tile_n * c * itemsize
    vmem_limit = max(params["vmem_limit"],
                     min(2 * tile_bytes + (4 << 20), params["vmem_cap"]))

    cost = pl.CostEstimate(
        flops=int(n_pad) * int(c) * (3 * contrastive_num + 2),
        transcendentals=0,
        bytes_accessed=int(n_pad) * int(c) * itemsize + int(n_pad) * 4 + n_splits * 4,
    )

    out = pl.pallas_call(
        functools.partial(_ccel_kernel, k=contrastive_num, keep_bf16=keep_bf16),
        grid=(n_splits, steps),
        in_specs=[
            pl.BlockSpec((tile_n, 1), lambda s, i: (s * steps + i, 0)),  # targets
            pl.BlockSpec((tile_n, c), lambda s, i: (s * steps + i, 0)),  # logits
        ],
        out_specs=pl.BlockSpec((1, 1), lambda s, i: (s, 0)),  # per-split accumulator
        out_shape=jax.ShapeDtypeStruct((n_splits, 1), jnp.float32),
        compiler_params=pltpu.CompilerParams(
            dimension_semantics=("parallel", "arbitrary"),
            vmem_limit_bytes=int(vmem_limit),
        ),
        cost_estimate=cost,
    )(tgt2d, logits)
    return jnp.sum(out)


def _reference(logits, target, k=2):
    # Pure-JAX reference mirroring the PyTorch forward.
    logp = jax.nn.log_softmax(logits.astype(jnp.float32), axis=1)
    topk_vals = jax.lax.top_k(logp, k)[0]                                # (N, k)
    tgt_vals = jnp.take_along_axis(logp, target.reshape(-1, 1), axis=1)  # (N, 1)
    return jnp.sum(-tgt_vals + topk_vals)


if __name__ == "__main__":
    key = jax.random.PRNGKey(0)
    k1, k2, k3, k4, k5, k6 = jax.random.split(key, 6)

    # --- test 1: small f32 case (single tile, single split) ---
    N, C, k_top = 8, 32, 2
    logits = jax.random.normal(k1, (N, C), dtype=jnp.float32)
    target = jax.random.randint(k2, (N,), 0, C, dtype=jnp.int32)
    loss = jax.block_until_ready(contrastive_cross_entropy_loss(logits, target, k_top))
    ref = _reference(logits, target, k_top)
    assert jnp.allclose(loss, ref, atol=1e-3, rtol=1e-4), (loss, ref)

    # --- test 2: bf16 logits, row padding, 2-way split, multi-step, C % 128 != 0 ---
    N2, C2, k2_top = 20, 48, 3
    logits2 = jax.random.normal(k3, (N2, C2), dtype=jnp.bfloat16)
    target2 = jax.random.randint(k4, (N2,), 0, C2, dtype=jnp.int32)
    loss2 = jax.block_until_ready(
        contrastive_cross_entropy_loss(logits2, target2, k2_top, tile_n=8))
    ref2 = _reference(logits2, target2, k2_top)
    assert jnp.allclose(loss2, ref2, atol=1e-2, rtol=1e-3), (loss2, ref2)

    # --- test 3: f32, many tiles + tile-count padding across the 2-way split ---
    N3, C3, k3_top = 300, 160, 2
    logits3 = jax.random.normal(k5, (N3, C3), dtype=jnp.float32)
    target3 = jax.random.randint(k6, (N3,), 0, C3, dtype=jnp.int32)
    loss3 = jax.block_until_ready(
        contrastive_cross_entropy_loss(logits3, target3, k3_top, tile_n=64))
    ref3 = _reference(logits3, target3, k3_top)
    assert jnp.allclose(loss3, ref3, atol=1e-2, rtol=1e-4), (loss3, ref3)

    print("KERNEL_OK")
</pallas_src>

<mosaic_0001>
module attributes {stable_mosaic.version = 11 : i64} {
  func.func @_ccel_kernel(%arg0: i32, %arg1: i32, %arg2: memref<8x1xi32, #tpu.memory_space<vmem>>, %arg3: memref<8x32xf32, #tpu.memory_space<vmem>>, %arg4: memref<1x1xf32, #tpu.memory_space<vmem>>) attributes {dimension_semantics = [#tpu.dimension_semantics<parallel>, #tpu.dimension_semantics<arbitrary>], iteration_bounds = array<i64: 1, 1>, scalar_prefetch = 0 : i64, scratch_operands = 0 : i64, tpu.core_type = #tpu.core_type<tc>, window_params = [{transform_indices = @transform_0, window_bounds = array<i64: 8, 1>}, {transform_indices = @transform_1, window_bounds = array<i64: 8, 32>}, {transform_indices = @transform_2, window_bounds = array<i64: 1, 1>}]} {
    %c0_i32 = arith.constant 0 : i32
    %0 = arith.cmpi eq, %arg1, %c0_i32 : i32
    %1 = arith.extui %0 : i1 to i32
    %c0_i32_0 = arith.constant 0 : i32
    %2 = arith.cmpi ne, %1, %c0_i32_0 : i32
    scf.if %2 {
      %cst_16 = arith.constant 0.000000e+00 : f32
      %40 = vector.broadcast %cst_16 : f32 to vector<1x1xf32>
      %c0_17 = arith.constant 0 : index
      %c0_18 = arith.constant 0 : index
      %41 = vector.load %arg4[%c0_17, %c0_18] : memref<1x1xf32, #tpu.memory_space<vmem>>, vector<1x1xf32>
      tpu.vector_store %arg4[%c0_17, %c0_18], %40 {strides = array<i32>} : memref<1x1xf32, #tpu.memory_space<vmem>>, vector<1x1xf32>,
    } else {
    }
    %c0 = arith.constant 0 : index
    %c0_1 = arith.constant 0 : index
    %3 = vector.load %arg3[%c0, %c0_1] : memref<8x32xf32, #tpu.memory_space<vmem>>, vector<8x32xf32>
    %4 = tpu.iota {dimensions = array<i32: 1>} : vector<8x32xi32>
    %c0_2 = arith.constant 0 : index
    %c0_3 = arith.constant 0 : index
    %5 = vector.load %arg2[%c0_2, %c0_3] : memref<8x1xi32, #tpu.memory_space<vmem>>, vector<8x1xi32>
    %6 = vector.broadcast %5 : vector<8x1xi32> to vector<8x32xi32>
    %7 = arith.cmpi eq, %4, %6 : vector<8x32xi32>
    %cst = arith.constant 0.000000e+00 : f32
    %8 = vector.broadcast %cst : f32 to vector<8x32xf32>
    %9 = arith.select %7, %3, %8 : vector<8x32xi1>, vector<8x32xf32>
    %cst_4 = arith.constant dense<0.000000e+00> : vector<8xf32>
    %10 = vector.multi_reduction <add>, %9, %cst_4 [1] : vector<8x32xf32> to vector<8xf32>
    %11 = vector.shape_cast %10 : vector<8xf32> to vector<8x1xf32>
    %cst_5 = arith.constant 0.000000e+00 : f32
    %12 = vector.broadcast %cst_5 : f32 to vector<8x1xf32>
    %cst_6 = arith.constant dense<0xFF800000> : vector<8xf32>
    %13 = vector.multi_reduction <maximumf>, %3, %cst_6 [1] : vector<8x32xf32> to vector<8xf32>
    %14 = vector.shape_cast %13 : vector<8xf32> to vector<8x1xf32>
    %15 = arith.addf %12, %14 : vector<8x1xf32>
    %16 = vector.broadcast %14 : vector<8x1xf32> to vector<8x32xf32>
    %17 = arith.cmpf oeq, %3, %16 : vector<8x32xf32>
    %c32_i32 = arith.constant 32 : i32
    %18 = vector.broadcast %c32_i32 : i32 to vector<8x32xi32>
    %19 = arith.select %17, %4, %18 : vector<8x32xi1>, vector<8x32xi32>
    %cst_7 = arith.constant dense<2147483647> : vector<8xi32>
    %20 = vector.multi_reduction <minsi>, %19, %cst_7 [1] : vector<8x32xi32> to vector<8xi32>
    %21 = vector.shape_cast %20 : vector<8xi32> to vector<8x1xi32>
    %22 = vector.broadcast %21 : vector<8x1xi32> to vector<8x32xi32>
    %23 = arith.cmpi eq, %4, %22 : vector<8x32xi32>
    %cst_8 = arith.constant 0xFF800000 : f32
    %24 = vector.broadcast %cst_8 : f32 to vector<8x32xf32>
    %25 = arith.select %23, %24, %3 : vector<8x32xi1>, vector<8x32xf32>
    %cst_9 = arith.constant dense<0xFF800000> : vector<8xf32>
    %26 = vector.multi_reduction <maximumf>, %25, %cst_9 [1] : vector<8x32xf32> to vector<8xf32>
    %27 = vector.shape_cast %26 : vector<8xf32> to vector<8x1xf32>
    %28 = arith.addf %15, %27 : vector<8x1xf32>
    %cst_10 = arith.constant 2.000000e+00 : f32
    %29 = vector.broadcast %cst_10 : f32 to vector<8x1xf32>
    %30 = arith.mulf %29, %11 : vector<8x1xf32>
    %31 = arith.subf %28, %30 : vector<8x1xf32>
    %32 = vector.shape_cast %31 : vector<8x1xf32> to vector<1x8x1xf32>
    %cst_11 = arith.constant dense<0.000000e+00> : vector<1xf32>
    %33 = vector.multi_reduction <add>, %32, %cst_11 [1, 2] : vector<1x8x1xf32> to vector<1xf32>
    %34 = vector.shape_cast %33 : vector<1xf32> to vector<1x1x1xf32>
    %35 = vector.extract %34[0, 0, 0] : f32 from vector<1x1x1xf32>
    %c0_12 = arith.constant 0 : index
    %c0_13 = arith.constant 0 : index
    %36 = vector.load %arg4[%c0_12, %c0_13] : memref<1x1xf32, #tpu.memory_space<vmem>>, vector<1x1xf32>
    %37 = vector.broadcast %35 : f32 to vector<1x1xf32>
    %38 = arith.addf %36, %37 : vector<1x1xf32>
    %c0_14 = arith.constant 0 : index
    %c0_15 = arith.constant 0 : index
    %39 = vector.load %arg4[%c0_14, %c0_15] : memref<1x1xf32, #tpu.memory_space<vmem>>, vector<1x1xf32>
    tpu.vector_store %arg4[%c0_14, %c0_15], %38 {strides = array<i32>} : memref<1x1xf32, #tpu.memory_space<vmem>>, vector<1x1xf32>,
    return
  }
  func.func @transform_0(%arg0: i32, %arg1: i32) -> (i32, i32) {
    %c1_i32 = arith.constant 1 : i32
    %0 = arith.muli %arg0, %c1_i32 : i32
    %1 = arith.addi %0, %arg1 : i32
    %c0_i32 = arith.constant 0 : i32
    %c0_i32_0 = arith.constant 0 : i32
    return %1, %c0_i32 : i32, i32
  }
  func.func @transform_1(%arg0: i32, %arg1: i32) -> (i32, i32) {
    %c1_i32 = arith.constant 1 : i32
    %0 = arith.muli %arg0, %c1_i32 : i32
    %1 = arith.addi %0, %arg1 : i32
    %c0_i32 = arith.constant 0 : i32
    %c0_i32_0 = arith.constant 0 : i32
    return %1, %c0_i32 : i32, i32
  }
  func.func @transform_2(%arg0: i32, %arg1: i32) -> (i32, i32) {
    %c0_i32 = arith.constant 0 : i32
    %c0_i32_0 = arith.constant 0 : i32
    return %arg0, %c0_i32 : i32, i32
  }
}

</mosaic_0001>

<bundles_post_ra>
// kernel: tpu_custom_call.1
= control target key start
LH: loop header
LB: loop body
LE: loop exit
PB: predicated region body
PF: predicated region fallthrough
CT: control target
= control target key end

     0   :  { %7 = vsyncpa [#allocation3], 0  ;;  %s267_s0 = inlined_call_operand.hbm [shape: s32[8,1], index: 0, kind: input, shape index: {}]   ;;  %s268_s1 = inlined_call_operand.hbm [shape: f32[8,32], index: 1, kind: input, shape index: {}]   ;;  %s269_s2 = inlined_call_operand.hbm [shape: f32[1,1], index: 2, kind: output, shape index: {}]  }
   0x1   :  { %8 = vsyncpa [#allocation6], 0 }
   0x2   :  { %9 = vsyncpa [#allocation4], 0  ;;  %s205_s9 = smov [#allocation2]   ;;  %s206_s11 = smov [#allocation5]  }
   0x3   :  { %s19_s10 = sshll.u32 %s205_s9, 4  ;;  %s32_s12 = sshll.u32 %s206_s11, 4  ;;  %s20_s10 = int_to_ptr.vmem [resolvable:$true] %s19_s10  ;;  %s33_s12 = int_to_ptr.vmem [resolvable:$true] %s32_s12 }
   0x4   :  { %s133_s15 = scalar_lea.hbm %s267_s0, 128 }
   0x5   :  { %p134_p0 = scmp.ne.s32.totalorder %s267_s0, %s133_s15  ;;  %p137_p1 = scmp.lt.u32.totalorder %s133_s15, %s267_s0 }
   0x7   :  { %p139_p2 = pnand %p137_p1, %p134_p0 }
   0x9   :  { %142 = shalt.err (!%p139_p2)
}
   0xa   :  { %s143_s20 = scalar_lea.vmem %s20_s10, 128  ;;  %p148_p4 = scmp.lt.s32.totalorder %s20_s10, %s20_s10 }
   0xb   :  { %p144_p3 = scmp.ne.s32.totalorder %s20_s10, %s143_s20  ;;  %p149_p5 = scmp.lt.s32.totalorder %s143_s20, %s143_s20 }
   0xd   :  { %p150_p6 = por %p149_p5, %p148_p4 }
   0xf   :  { %p151_p7 = pnand %p150_p6, %p144_p3 }
  0x11   :  { %154 = shalt.err (!%p151_p7)
}
  0x12   :  { %22 = dma.hbm_to_vmem [thread:$0]  %s267_s0, 128, %s20_s10, [#allocation3]  }
  0x13   :  { %s155_s25 = scalar_lea.hbm %s268_s1, 128 }
  0x14   :  { %p156_p8 = scmp.ne.s32.totalorder %s268_s1, %s155_s25  ;;  %p159_p9 = scmp.lt.u32.totalorder %s155_s25, %s268_s1 }
  0x16   :  { %p161_p10 = pnand %p159_p9, %p156_p8 }
  0x18   :  { %164 = shalt.err (!%p161_p10)
}
  0x19   :  { %s165_s30 = scalar_lea.vmem %s33_s12, 128  ;;  %p170_p12 = scmp.lt.s32.totalorder %s33_s12, %s33_s12 }
  0x1a   :  { %p166_p11 = scmp.ne.s32.totalorder %s33_s12, %s165_s30  ;;  %p171_p13 = scmp.lt.s32.totalorder %s165_s30, %s165_s30 }
  0x1c   :  { %p172_p0 = por %p171_p13, %p170_p12 }
  0x1e   :  { %p173_p1 = pnand %p172_p0, %p166_p11 }
  0x20   :  { %176 = shalt.err (!%p173_p1)
}
  0x21   :  { %35 = dma.hbm_to_vmem [thread:$0]  %s268_s1, 128, %s33_s12, [#allocation6]  }
  0x22   :  { %199 = dma.done.wait [#allocation3], 128  }
  0x23   :  { %200 = vsyncadd [#allocation3], 4294967168 }
  0x24   :  { %201 = dma.done.wait [#allocation6], 128  }
  0x25   :  { %202 = vsyncadd [#allocation6], 4294967168  ;;  %vm48_vm0 = vcmask 0   ;;  %v207_v0 = vmov 0.0   ;;  %vm59_vm1 = vcmask 261120   ;;  %v50_v1 = vld [vmem:[#allocation5] sm:$0xff]  ;;  %v51_v3 = vlaneseq }
  0x26   :  { %49 = vst.msk [vmem:[#allocation7] sm:$0x1] %vm48_vm0, %v207_v0  ;;  %v63_v2 = vsel %vm59_vm1, %v50_v1, -inf  ;;  %v208_v10 = vmov 0   ;;  %v53_v15 = vld [vmem:[#allocation2] sm:$0xff]  ;;  %vm92_vm6 = vcmask 7168  }
  0x27   :  { %64 = vmax.xlane.f32.xlu0 %v63_v2  ;;  %v52_v4 = vand.u32 127, %v51_v3  ;;  %131 = vset.pattern.permute.xlu1 %v208_v10  ;;  %s209_s1 = smov [#allocation7]  }
  0x28   :  { %132 = vset.pattern.permute.xlu0 %v208_v10  ;;  %s114_s4 = sshll.u32 %s209_s1, 4  ;;  %s115_s4 = int_to_ptr.vmem [resolvable:$true] %s114_s4 }
  0x29   :  { %s177_s6 = scalar_lea.vmem %s115_s4, 16  ;;  %s181_s7 = scalar_lea.vmem %s115_s4, 32 }
  0x2a   :  { %p178_p2 = scmp.ne.s32.totalorder %s115_s4, %s177_s6  ;;  %p182_p3 = scmp.lt.s32.totalorder %s115_s4, %s115_s4 }
  0x2b   :  { %p183_p4 = scmp.lt.s32.totalorder %s181_s7, %s177_s6 }
  0x2d   :  { %v103_v39 = vld [vmem:[#allocation7] sm:$0x1]  ;;  %p184_p5 = por %p183_p4, %p182_p3 }
  0x2f   :  { %p185_p6 = pnand %p184_p5, %p178_p2 }
  0xb4   :  { %v65_v5 = vpop.xlane.xlu0 %64 }
  0xb5   :  { %vm67_vm2 = vcmp.eq.f32.partialorder %v50_v1, %v65_v5 }
  0xb6   :  { %v68_v6 = vsel %vm67_vm2, %v52_v4, 32 }
  0xb7   :  { %v69_v7 = vsel %vm59_vm1, %v68_v6, 2147483647 }
  0xb8   :  { %v71_v8 = vshra.s32 %v69_v7, 16  ;;  %v70_v11 = vand.u32 65535, %v69_v7 }
  0xba   :  { %v73_v9 = vcvt.s32.f32 %v71_v8  ;;  %v72_v13 = vcvt.s32.f32 %v70_v11 }
  0xbc   :  { %74 = vmin.xlane.f32.xlu0 %v73_v9 }
 0x149   :  { %v75_v12 = vpop.xlane.xlu0 %74 }
 0x14a   :  { %vm76_vm3 = vcmp.eq.f32.partialorder %v73_v9, %v75_v12  ;;  %v81_v16 = vcvt.f32.s32 %v75_v12 }
 0x14b   :  { %v77_v14 = vsel %vm76_vm3, %v72_v13, inf }
 0x14c   :  { %78 = vmin.xlane.f32.xlu1 %v77_v14  ;;  %v82_v18 = vshll.u32 %v81_v16, 16 }
 0x15d   :  { %55 = vperm.xlu1 %131, %v53_v15  }
 0x1d9   :  { %v79_v17 = vpop.xlane.xlu1 %78 }
 0x1da   :  { %v80_v19 = vcvt.f32.s32 %v79_v17 }
 0x1dc   :  { %v83_v20 = vadd.s32 %v82_v18, %v80_v19 }
 0x1dd   :  { %v56_v21 = vpop.permute.xlu1 %55 }
 0x1de   :  { %vm57_vm4 = vcmp.eq.s32.totalorder %v52_v4, %v56_v21  ;;  %vm84_vm5 = vcmp.eq.s32.totalorder %v52_v4, %v83_v20 }
 0x1df   :  { %v58_v22 = vsel %vm57_vm4, %v50_v1, 0.0  ;;  %v85_v24 = vsel %vm84_vm5, -inf, %v50_v1 }
 0x1e0   :  { %v60_v23 = vsel %vm59_vm1, %v58_v22, 0.0  ;;  %v86_v25 = vsel %vm59_vm1, %v85_v24, -inf }
 0x1e1   :  { %61 = vadd.xlane.f32.xlu0 %v60_v23 }
 0x1e5   :  { %87 = vmax.xlane.f32.xlu0 %v86_v25 }
 0x26e   :  { %v62_v26 = vpop.xlane.xlu0 %61 }
 0x26f   :  { %v90_v28 = vmul.f32 2.0, %v62_v26 }
 0x272   :  { %v88_v27 = vpop.xlane.xlu0 %87 }
 0x273   :  { %v89_v29 = vadd.f32 %v88_v27, %v65_v5 }
 0x275   :  { %v91_v30 = vsub.f32 %v89_v29, %v90_v28 }
 0x277   :  { %v93_v31 = vsel %vm92_vm6, %v91_v30, 0.0 }
 0x278   :  { %94 = vadd.xlane.f32.xlu0 %v93_v31 }
 0x305   :  { %v95_v32 = vpop.xlane.xlu0 %94 }
 0x306   :  { %v96_v33 = vrot.slane %v95_v32, 4 }
 0x308   :  { %v97_v34 = vadd.f32 %v96_v33, %v95_v32 }
 0x30a   :  { %v98_v35 = vrot.slane %v97_v34, 2 }
 0x30c   :  { %v99_v36 = vadd.f32 %v98_v35, %v97_v34 }
 0x30e   :  { %v100_v37 = vrot.slane %v99_v36, 1 }
 0x310   :  { %v101_v38 = vadd.f32 %v100_v37, %v99_v36 }
 0x312   :  { %124 = vpush %v101_v38 }
 0x343   :  { %s125_s5 = spop %124 }
 0x344   :  { %v104_v40 = vstv %s125_s5 }
 0x345   :  { %v105_v41 = vadd.f32 %v104_v40, %v103_v39 }
 0x347   :  { %107 = vst.msk [vmem:[#allocation7] sm:$0x1] %vm48_vm0, %v105_v41 }
 0x348   :  { %188 = shalt.err (!%p185_p6)
}
 0x349   :  { %s189_s10 = scalar_lea.hbm %s269_s2, 16 }
 0x34a   :  { %p190_p7 = scmp.ne.s32.totalorder %s269_s2, %s189_s10  ;;  %p193_p8 = scmp.lt.u32.totalorder %s189_s10, %s269_s2 }
 0x34c   :  { %p195_p9 = pnand %p193_p8, %p190_p7 }
 0x34e   :  { %198 = shalt.err (!%p195_p9)
}
 0x34f   :  { %117 = dma.vmem_to_hbm [thread:$0]  %s115_s4, 16, %s269_s2, [#allocation4]  }
 0x350   :  { %203 = dma.done.wait [#allocation4], 16  }
 0x351   :  { %204 = vsyncadd [#allocation4], 4294967280 }
 0x352   :  { %121 = vsyncpa [#allocation3], 1 }
 0x353   :  { %122 = vsyncpa [#allocation6], 1 }
 0x354   :  { %123 = vsyncpa [#allocation4], 1 }

</bundles_post_ra>
